<compile_context>
chip_gen: v6e
topology: v6e:2x2x1
jax: 0.10.0
libtpu: 0.0.40
codegen_flags: <defaults>
</compile_context>

<pallas_src>
import functools

import jax
import jax.numpy as jnp
from jax import lax
from jax.experimental import pallas as pl
from jax.experimental.pallas import tpu as pltpu


def _vmem_limit_bytes():
    """Generation-aware VMEM budget (v5e/v6e: 128 MiB physical, v7x: 64 MiB)."""
    try:
        cap = int(pltpu.get_tpu_info().vmem_capacity_bytes)
    except Exception:  # query unavailable -> conservative default
        cap = 64 * 1024 * 1024
    return max(32 * 1024 * 1024, min(3 * cap // 4, 96 * 1024 * 1024))


VMEM_LIMIT_BYTES = _vmem_limit_bytes()


def _row_tile(m):
    """Row (sublane-axis) tile: 128 when it divides m, else the whole batch."""
    assert m % 8 == 0, "batch must be a multiple of 8 (sublane tiling)"
    return 128 if m % 128 == 0 else m


def _l2_normalize(v):
    # F.normalize(x, dim=-1, eps=1e-12): x / max(||x||, 1e-12)   (rsqrt -> EUP)
    return v * lax.rsqrt(
        jnp.maximum(jnp.sum(v * v, axis=-1, keepdims=True), 1e-24))


# ----------------------------------------------------------------------------
# Kernel 1: query encoder  qn = normalize(x @ w_q)       (single K pass, full D)
# ----------------------------------------------------------------------------
def _encq_kernel(x_ref, w_ref, qn_ref):
    feat = jnp.dot(x_ref[...], w_ref[...], preferred_element_type=jnp.float32)
    qn_ref[...] = _l2_normalize(feat)


def encoder_q_forward(x, w):
    M, F = x.shape
    D = w.shape[1]
    tm = _row_tile(M)
    return pl.pallas_call(
        _encq_kernel,
        grid=(M // tm,),
        in_specs=[pl.BlockSpec((tm, F), lambda i: (i, 0)),
                  pl.BlockSpec((F, D), lambda i: (0, 0))],
        out_specs=pl.BlockSpec((tm, D), lambda i: (i, 0)),
        out_shape=jax.ShapeDtypeStruct((M, D), jnp.float32),
        compiler_params=pltpu.CompilerParams(
            dimension_semantics=("parallel",),
            vmem_limit_bytes=VMEM_LIMIT_BYTES),
    )(x, w)


# ----------------------------------------------------------------------------
# Kernel 2: fused momentum update + key encoder
#   w_k_new = m*w_k + (1-m)*w_q   (VPU, once, kept in VMEM scratch)
#   kn      = normalize(x @ w_k_new)
# ----------------------------------------------------------------------------
def _enck_kernel(x_ref, wk_ref, wq_ref, kn_ref, wknew_ref, wk_vmem, *, momentum):
    @pl.when(pl.program_id(0) == 0)
    def _():
        w_new = momentum * wk_ref[...] + (1.0 - momentum) * wq_ref[...]
        wk_vmem[...] = w_new
        wknew_ref[...] = w_new          # HBM writeback once, not per row tile

    feat = jnp.dot(x_ref[...], wk_vmem[...],
                   preferred_element_type=jnp.float32)
    kn_ref[...] = _l2_normalize(feat)


def encoder_k_forward_and_momentum(x, w_k, w_q, momentum):
    # TODO(synk): momentum is baked in as a Python constant; a momentum
    # schedule would recompile -- pass it via SMEM if it ever varies.
    M, F = x.shape
    D = w_k.shape[1]
    tm = _row_tile(M)
    return pl.pallas_call(
        functools.partial(_enck_kernel, momentum=float(momentum)),
        grid=(M // tm,),
        in_specs=[pl.BlockSpec((tm, F), lambda i: (i, 0)),
                  pl.BlockSpec((F, D), lambda i: (0, 0)),
                  pl.BlockSpec((F, D), lambda i: (0, 0))],
        out_specs=[pl.BlockSpec((tm, D), lambda i: (i, 0)),
                   pl.BlockSpec((F, D), lambda i: (0, 0))],
        out_shape=(jax.ShapeDtypeStruct((M, D), jnp.float32),
                   jax.ShapeDtypeStruct((F, D), jnp.float32)),
        scratch_shapes=[pltpu.VMEM((F, D), jnp.float32)],
        # flat inputs (x, w_k, w_q): reuse the w_k buffer for w_k_new
        input_output_aliases={1: 1},
        compiler_params=pltpu.CompilerParams(
            dimension_semantics=("arbitrary",),
            vmem_limit_bytes=VMEM_LIMIT_BYTES),
    )(x, w_k, w_q)


# ----------------------------------------------------------------------------
# Kernel 3: fused logits  [pos | neg] in one lane-dense [N, 1+Q] output.
# queue_ext is [1 + Q + 7, D]: row 0 is permanently zero, rows 1..Q hold the
# keys, 7 zero tail rows keep the block 8-row aligned.  Therefore
# qn @ queue_ext.T already has column 0 == 0, and the positive similarity is
# selected into that column -- no concatenate, no unaligned stores.
# ----------------------------------------------------------------------------
def _logits_kernel(qn_ref, kn_ref, qext_ref, logits_ref, *, inv_T):
    qn = qn_ref[...]
    kn = kn_ref[...]
    n, L = logits_ref.shape                      # L = 1 + Q
    neg_ext = lax.dot_general(                   # [n, Q + 8], column 0 is zero
        qn, qext_ref[...],
        dimension_numbers=(((1,), (1,)), ((), ())),
        preferred_element_type=jnp.float32)
    pos = jnp.sum(qn * kn, axis=-1, keepdims=True)          # [n, 1]
    col = lax.broadcasted_iota(jnp.int32, (n, L), 1)
    logits = jnp.where(col == 0, jnp.broadcast_to(pos, (n, L)), neg_ext[:, :L])
    logits_ref[...] = logits * inv_T


def fused_logits(qn, kn, queue_ext, T):
    # TODO(synk): for the production queue (Q=65536) tile the queue axis
    # (grid over 4-8 MiB key tiles, output resident) instead of one block.
    N, D = qn.shape
    QE = queue_ext.shape[0]
    L = QE - 7                                   # 1 + Q
    return pl.pallas_call(
        functools.partial(_logits_kernel, inv_T=1.0 / T),
        grid=(1,),
        in_specs=[pl.BlockSpec((N, D), lambda i: (0, 0)),
                  pl.BlockSpec((N, D), lambda i: (0, 0)),
                  pl.BlockSpec((QE, D), lambda i: (0, 0))],
        out_specs=pl.BlockSpec((N, L), lambda i: (0, 0)),
        out_shape=jax.ShapeDtypeStruct((N, L), jnp.float32),
        compiler_params=pltpu.CompilerParams(
            dimension_semantics=("arbitrary",),
            vmem_limit_bytes=VMEM_LIMIT_BYTES),
    )(qn, kn, queue_ext)


# ----------------------------------------------------------------------------
# Kernel 4: queue enqueue -- in-place (aliased) write of the N new key rows at
# a scalar-prefetched dynamic offset via one VMEM->HBM DMA.  The aliased queue
# input uses memory_space=pl.ANY so nothing else is copied.
# ----------------------------------------------------------------------------
def _enqueue_kernel(start_ref, kn_ref, q_in_ref, q_out_ref, sem):
    del q_in_ref                     # aliased with q_out_ref; never read
    n = kn_ref.shape[0]
    row0 = start_ref[0] + 1          # +1: row 0 of queue_ext is the zero row
    cp = pltpu.make_async_copy(kn_ref, q_out_ref.at[pl.ds(row0, n)], sem)
    cp.start()
    cp.wait()


def enqueue(queue_ext, k_norm, start):
    QE, D = queue_ext.shape
    N = k_norm.shape[0]
    assert N % 8 == 0, "batch must be a multiple of 8 (sublane tiling)"
    start_arr = jnp.asarray([start], dtype=jnp.int32)
    return pl.pallas_call(
        _enqueue_kernel,
        grid_spec=pltpu.PrefetchScalarGridSpec(
            num_scalar_prefetch=1,
            grid=(1,),
            in_specs=[pl.BlockSpec((N, D), lambda i, s: (0, 0)),
                      pl.BlockSpec(memory_space=pl.ANY)],
            out_specs=pl.BlockSpec(memory_space=pl.ANY),
            scratch_shapes=[pltpu.SemaphoreType.DMA],
        ),
        out_shape=jax.ShapeDtypeStruct((QE, D), queue_ext.dtype),
        # flat inputs: (start, k_norm, queue_ext) -> queue_ext aliases output 0
        input_output_aliases={2: 0},
        compiler_params=pltpu.CompilerParams(
            dimension_semantics=("arbitrary",),
            has_side_effects=True),
    )(start_arr, k_norm, queue_ext)


# ----------------------------------------------------------------------------
# MoCo module (single-device; torch.distributed world_size == 1)
# ----------------------------------------------------------------------------
class MoCoPallas:
    """Queue stored as [1 + Q + 7, dim]: row 0 zero (logits layout trick),
    rows 1..Q hold the keys, 7 zero tail rows for 8-row alignment."""

    def __init__(self, dim, momentum, T, Q, feat_in, key):
        k_w, k_q = jax.random.split(key)
        # TODO(synk): the torchvision ResNet-50 backbone is not translated; a
        # deterministic linear projection stands in for both encoders
        # (encoder_k copies encoder_q at init, as in MoCo.__init__).
        # TODO(synk): bf16 weight/queue storage would halve HBM traffic; kept
        # f32 here for numerical parity with the torch reference.
        self.w_q = jax.random.normal(k_w, (feat_in, dim), jnp.float32) * 0.02
        self.w_k = jnp.copy(self.w_q)
        keys = jax.random.normal(k_q, (Q, dim), jnp.float32)
        keys = _l2_normalize(keys)       # == F.normalize over the feature axis
        self.queue_ext = jnp.zeros((Q + 8, dim), jnp.float32).at[1:1 + Q].set(keys)
        self.start = 0
        self.Q = Q
        self.momentum = momentum
        self.T = T

    @property
    def queue(self):
        return self.queue_ext[1:1 + self.Q]

    def update_queue(self, k_norm):
        batch = k_norm.shape[0]
        assert self.Q % batch == 0, "queue length must be a multiple of batch"
        assert self.start % batch == 0
        self.queue_ext = enqueue(self.queue_ext, k_norm, self.start)
        self.start = (self.start + batch) % self.Q

    def forward(self, im_q, im_k, shuffle_key=None):
        # TODO(synk): mutates Python state (w_k, queue, start), so the whole
        # forward is not jax.jit-able as-is (each pallas_call is still cached).
        # world_size == 1 and a row-wise encoder: shuffle∘encode∘unshuffle is
        # the identity, so the batch shuffle is dropped (per perf review).
        del shuffle_key
        N = im_q.shape[0]

        # q branch: qn = normalize(encoder_q(im_q))   (normalize fused in epilogue)
        qn = encoder_q_forward(im_q.reshape(N, -1), self.w_q)

        # k branch: w_k <- m*w_k + (1-m)*w_q  and  kn = normalize(x @ w_k_new)
        kn, self.w_k = encoder_k_forward_and_momentum(
            im_k.reshape(N, -1), self.w_k, self.w_q, self.momentum)

        # fused [pos | neg] logits against the pre-update queue, scaled by 1/T
        logits = fused_logits(qn, kn, self.queue_ext, self.T)

        # TODO(synk): torch.long is int64; JAX default int here is int32.
        label = jnp.zeros((N,), dtype=jnp.int32)

        # enqueue the normalized keys (aliased in-place slab DMA)
        self.update_queue(kn)
        return logits, label


if __name__ == "__main__":
    key = jax.random.PRNGKey(0)
    k_imq, k_imk, k_params, k_shuffle = jax.random.split(key, 4)

    # Small but TPU-tile-friendly shapes: batch multiple of 8, dim multiple of 128.
    N, C, H, W = 8, 4, 16, 16          # NCHW images -> flattened feature 1024
    dim, Q = 128, 1024                 # feature dim, queue length
    momentum, T = 0.999, 0.07

    im_q = jax.random.normal(k_imq, (N, C, H, W), jnp.float32)
    im_k = jax.random.normal(k_imk, (N, C, H, W), jnp.float32)

    model = MoCoPallas(dim=dim, momentum=momentum, T=T, Q=Q,
                       feat_in=C * H * W, key=k_params)

    # Capture pre-forward state for the pure-JAX reference.
    w_q0, w_k0 = model.w_q, model.w_k
    queue0 = model.queue               # [Q, dim] keys before the enqueue

    logits, label = model.forward(im_q, im_k, shuffle_key=k_shuffle)
    jax.block_until_ready((logits, label, model.queue_ext, model.w_k))

    # ---- pure-JAX reference (loose tolerance: MXU vs XLA matmul rounding) ----
    hp = lax.Precision.HIGHEST
    x_q = im_q.reshape(N, -1)
    x_k = im_k.reshape(N, -1)
    qn_ref = _l2_normalize(jnp.dot(x_q, w_q0, precision=hp))
    wk_new_ref = momentum * w_k0 + (1.0 - momentum) * w_q0
    kn_ref = _l2_normalize(jnp.dot(x_k, wk_new_ref, precision=hp))
    pos_ref = jnp.sum(qn_ref * kn_ref, axis=-1, keepdims=True)
    neg_ref = jnp.dot(qn_ref, queue0.T, precision=hp)
    logits_ref = jnp.concatenate([pos_ref, neg_ref], axis=1) / T

    assert logits.shape == (N, 1 + Q)
    assert label.shape == (N,)
    assert model.queue_ext.shape == (Q + 8, dim)
    assert jnp.allclose(logits, logits_ref, rtol=5e-2, atol=1.5e-1)
    assert jnp.allclose(model.queue[:N], kn_ref, rtol=5e-2, atol=1e-2)
    assert jnp.allclose(model.w_k, wk_new_ref, rtol=1e-5, atol=1e-6)
    print("KERNEL_OK")
</pallas_src>

<mosaic_0001>
module attributes {stable_mosaic.version = 11 : i64} {
  func.func @_encq_kernel(%arg0: i32, %arg1: memref<8x1024xf32, #tpu.memory_space<vmem>>, %arg2: memref<1024x128xf32, #tpu.memory_space<vmem>>, %arg3: memref<8x128xf32, #tpu.memory_space<vmem>>) attributes {dimension_semantics = [#tpu.dimension_semantics<parallel>], iteration_bounds = array<i64: 1>, scalar_prefetch = 0 : i64, scratch_operands = 0 : i64, tpu.core_type = #tpu.core_type<tc>, window_params = [{transform_indices = @transform_0, window_bounds = array<i64: 8, 1024>}, {pipeline_mode = #tpu.pipeline_mode<synchronous>, transform_indices = @transform_1, window_bounds = array<i64: 1024, 128>}, {transform_indices = @transform_2, window_bounds = array<i64: 8, 128>}]} {
    %c0 = arith.constant 0 : index
    %c0_0 = arith.constant 0 : index
    %0 = vector.load %arg1[%c0, %c0_0] : memref<8x1024xf32, #tpu.memory_space<vmem>>, vector<8x1024xf32>
    %c0_1 = arith.constant 0 : index
    %c0_2 = arith.constant 0 : index
    %1 = vector.load %arg2[%c0_1, %c0_2] : memref<1024x128xf32, #tpu.memory_space<vmem>>, vector<1024x128xf32>
    %cst = arith.constant dense<0.000000e+00> : vector<8x128xf32>
    %2 = tpu.matmul %0, %1, %cst {dimension_numbers = #tpu.dot_dimension_numbers<[1], [0], [0], [1], [0, 0, 1, 1], [], []>} : vector<8x1024xf32>, vector<1024x128xf32>, vector<8x128xf32> -> vector<8x128xf32>
    %3 = arith.mulf %2, %2 : vector<8x128xf32>
    %cst_3 = arith.constant dense<0.000000e+00> : vector<8xf32>
    %4 = vector.multi_reduction <add>, %3, %cst_3 [1] : vector<8x128xf32> to vector<8xf32>
    %5 = vector.shape_cast %4 : vector<8xf32> to vector<8x1xf32>
    %cst_4 = arith.constant 1.000000e-24 : f32
    %6 = vector.broadcast %cst_4 : f32 to vector<8x1xf32>
    %7 = arith.maximumf %5, %6 : vector<8x1xf32>
    %8 = math.rsqrt %7 : vector<8x1xf32>
    %9 = vector.broadcast %8 : vector<8x1xf32> to vector<8x128xf32>
    %10 = arith.mulf %2, %9 : vector<8x128xf32>
    %c0_5 = arith.constant 0 : index
    %c0_6 = arith.constant 0 : index
    %11 = vector.load %arg3[%c0_5, %c0_6] : memref<8x128xf32, #tpu.memory_space<vmem>>, vector<8x128xf32>
    tpu.vector_store %arg3[%c0_5, %c0_6], %10 {strides = array<i32>} : memref<8x128xf32, #tpu.memory_space<vmem>>, vector<8x128xf32>,
    return
  }
  func.func @transform_0(%arg0: i32) -> (i32, i32) {
    %c0_i32 = arith.constant 0 : i32
    %c0_i32_0 = arith.constant 0 : i32
    return %arg0, %c0_i32 : i32, i32
  }
  func.func @transform_1(%arg0: i32) -> (i32, i32) {
    %c0_i32 = arith.constant 0 : i32
    %c0_i32_0 = arith.constant 0 : i32
    %c0_i32_1 = arith.constant 0 : i32
    return %c0_i32, %c0_i32_0 : i32, i32
  }
  func.func @transform_2(%arg0: i32) -> (i32, i32) {
    %c0_i32 = arith.constant 0 : i32
    %c0_i32_0 = arith.constant 0 : i32
    return %arg0, %c0_i32 : i32, i32
  }
}

</mosaic_0001>

<bundles_post_ra>
// kernel: tpu_custom_call.1
= control target key start
LH: loop header
LB: loop body
LE: loop exit
PB: predicated region body
PF: predicated region fallthrough
CT: control target
= control target key end

     0   :  { %7 = vsyncpa [#allocation3], 0  ;;  %s719_s0 = inlined_call_operand.hbm [shape: f32[8,1024], index: 0, kind: input, shape index: {}]   ;;  %s720_s1 = inlined_call_operand.hbm [shape: f32[1024,128], index: 1, kind: input, shape index: {}]   ;;  %s721_s2 = inlined_call_operand.hbm [shape: f32[8,128], index: 2, kind: output, shape index: {}]  }
   0x1   :  { %8 = vsyncpa [#allocation6], 0 }
   0x2   :  { %9 = vsyncpa [#allocation4], 0  ;;  %s690_s9 = smov [#allocation2]   ;;  %s691_s11 = smov [#allocation5]  }
   0x3   :  { %s16_s10 = sshll.u32 %s690_s9, 4  ;;  %s25_s12 = sshll.u32 %s691_s11, 4  ;;  %s17_s10 = int_to_ptr.vmem [resolvable:$true] %s16_s10  ;;  %s26_s12 = int_to_ptr.vmem [resolvable:$true] %s25_s12 }
   0x4   :  { %s632_s13 = scalar_lea.vmem %s17_s10, 1024  ;;  %p637_p1 = scmp.lt.s32.totalorder %s17_s10, %s17_s10 }
   0x5   :  { %p633_p0 = scmp.ne.s32.totalorder %s17_s10, %s632_s13  ;;  %p638_p2 = scmp.lt.s32.totalorder %s632_s13, %s632_s13 }
   0x7   :  { %p639_p3 = por %p638_p2, %p637_p1 }
   0x9   :  { %p640_p4 = pnand %p639_p3, %p633_p0 }
   0xb   :  { %643 = shalt.err (!%p640_p4)
}
   0xc   :  { %19 = dma.hbm_to_vmem [thread:$0]  %s719_s0, 1024, %s17_s10, [#allocation3]  }
   0xd   :  { %s652_s16 = scalar_lea.vmem %s26_s12, 16384  ;;  %p657_p6 = scmp.lt.s32.totalorder %s26_s12, %s26_s12 }
   0xe   :  { %p653_p5 = scmp.ne.s32.totalorder %s26_s12, %s652_s16  ;;  %p658_p7 = scmp.lt.s32.totalorder %s652_s16, %s652_s16 }
  0x10   :  { %p659_p8 = por %p658_p7, %p657_p6 }
  0x12   :  { %p660_p9 = pnand %p659_p8, %p653_p5 }
  0x14   :  { %663 = shalt.err (!%p660_p9)
}
  0x15   :  { %s692_s17 = smov 128   ;;  %s693_s18 = smov 8  }
  0x16   :  { %31 = dma.hbm_to_vmem [thread:$0]  %s720_s1, 16384, %s26_s12, [#allocation6], %s692_s17, %s692_s17, %s693_s18  }
  0x17   :  { %684 = dma.done.wait [#allocation3], 1024  }
  0x18   :  { %685 = vsyncadd [#allocation3], 4294966272 }
  0x19   :  { %686 = dma.done.wait [#allocation6], 16384  }
  0x1a   :  { %687 = vsyncadd [#allocation6], 4294950912  ;;  %v77_v0 = vld [vmem:[#allocation5 + $0xf8] sm:$0xff]  ;;  %v76_v4 = vld [vmem:[#allocation5 + $0xf0] sm:$0xff]  ;;  %s694_s0 = smov [#allocation7]  }
  0x1b   :  { %v109_v1 = vld [vmem:[#allocation5 + $0x1f8] sm:$0xff]  ;;  %477 = vmatprep.subr.mxu0 %v77_v0  ;;  %v108_v5 = vld [vmem:[#allocation5 + $0x1f0] sm:$0xff]  ;;  %v75_v8 = vld [vmem:[#allocation5 + $0xe8] sm:$0xff]  ;;  %s467_s1 = sshll.u32 %s694_s0, 4  ;;  %s468_s1 = int_to_ptr.vmem [resolvable:$true] %s467_s1 }
  0x1c   :  { %v61_v2 = vld [vmem:[#allocation5 + $0x78] sm:$0xff]  ;;  %512 = vmatprep.subr.mxu1 %v109_v1  ;;  %v60_v6 = vld [vmem:[#allocation5 + $0x70] sm:$0xff]  ;;  %v107_v9 = vld [vmem:[#allocation5 + $0x1e8] sm:$0xff]  ;;  %s664_s21 = scalar_lea.vmem %s468_s1, 128  ;;  %p669_p11 = scmp.lt.s32.totalorder %s468_s1, %s468_s1 }
  0x1d   :  { %v93_v3 = vld [vmem:[#allocation5 + $0x178] sm:$0xff]  ;;  %478 = vmatpush3.msra.mxu0 %v61_v2  ;;  %v92_v7 = vld [vmem:[#allocation5 + $0x170] sm:$0xff]  ;;  %v59_v10 = vld [vmem:[#allocation5 + $0x68] sm:$0xff]  ;;  %p665_p10 = scmp.ne.s32.totalorder %s468_s1, %s664_s21  ;;  %p670_p12 = scmp.lt.s32.totalorder %s664_s21, %s664_s21 }
  0x1e   :  { %513 = vmatpush3.msra.mxu1 %v93_v3  ;;  %479 = vmatprep.subr.mxu0 %v76_v4  ;;  %v91_v11 = vld [vmem:[#allocation5 + $0x168] sm:$0xff]  ;;  %v74_v12 = vld [vmem:[#allocation5 + $0xe0] sm:$0xff]  ;;  %v73_v16 = vld [vmem:[#allocation5 + $0xd8] sm:$0xff] }
  0x1f   :  { %514 = vmatprep.subr.mxu1 %v108_v5  ;;  %480 = vmatpush3.msra.mxu0 %v60_v6  ;;  %v106_v13 = vld [vmem:[#allocation5 + $0x1e0] sm:$0xff]  ;;  %v105_v17 = vld [vmem:[#allocation5 + $0x1d8] sm:$0xff]  ;;  %v72_v20 = vld [vmem:[#allocation5 + $0xd0] sm:$0xff]  ;;  %p671_p13 = por %p670_p12, %p669_p11 }
  0x20   :  { %515 = vmatpush3.msra.mxu1 %v92_v7  ;;  %481 = vmatprep.subr.mxu0 %v75_v8  ;;  %v58_v14 = vld [vmem:[#allocation5 + $0x60] sm:$0xff]  ;;  %v57_v18 = vld [vmem:[#allocation5 + $0x58] sm:$0xff]  ;;  %v104_v21 = vld [vmem:[#allocation5 + $0x1d0] sm:$0xff] }
  0x21   :  { %516 = vmatprep.subr.mxu1 %v107_v9  ;;  %v90_v15 = vld [vmem:[#allocation5 + $0x160] sm:$0xff]  ;;  %482 = vmatpush3.msra.mxu0 %v59_v10  ;;  %v89_v19 = vld [vmem:[#allocation5 + $0x158] sm:$0xff]  ;;  %v56_v22 = vld [vmem:[#allocation5 + $0x50] sm:$0xff]  ;;  %p672_p0 = pnand %p671_p13, %p665_p10 }
  0x22   :  { %517 = vmatpush3.msra.mxu1 %v91_v11  ;;  %483 = vmatprep.subr.mxu0 %v74_v12  ;;  %v88_v23 = vld [vmem:[#allocation5 + $0x150] sm:$0xff]  ;;  %v71_v24 = vld [vmem:[#allocation5 + $0xc8] sm:$0xff]  ;;  %v70_v28 = vld [vmem:[#allocation5 + $0xc0] sm:$0xff] }
  0x23   :  { %518 = vmatprep.subr.mxu1 %v106_v13  ;;  %484 = vmatpush3.msra.mxu0 %v58_v14  ;;  %v103_v25 = vld [vmem:[#allocation5 + $0x1c8] sm:$0xff]  ;;  %v102_v29 = vld [vmem:[#allocation5 + $0x1c0] sm:$0xff]  ;;  %v69_v32 = vld [vmem:[#allocation5 + $0xb8] sm:$0xff] }
  0x24   :  { %519 = vmatpush3.msra.mxu1 %v90_v15  ;;  %485 = vmatprep.subr.mxu0 %v73_v16  ;;  %v55_v26 = vld [vmem:[#allocation5 + $0x48] sm:$0xff]  ;;  %v54_v30 = vld [vmem:[#allocation5 + $0x40] sm:$0xff]  ;;  %v101_v33 = vld [vmem:[#allocation5 + $0x1b8] sm:$0xff] }
  0x25   :  { %520 = vmatprep.subr.mxu1 %v105_v17  ;;  %486 = vmatpush3.msra.mxu0 %v57_v18  ;;  %v87_v27 = vld [vmem:[#allocation5 + $0x148] sm:$0xff]  ;;  %v86_v31 = vld [vmem:[#allocation5 + $0x140] sm:$0xff]  ;;  %v53_v34 = vld [vmem:[#allocation5 + $0x38] sm:$0xff] }
  0x26   :  { %521 = vmatpush3.msra.mxu1 %v89_v19  ;;  %487 = vmatprep.subr.mxu0 %v72_v20  ;;  %v85_v35 = vld [vmem:[#allocation5 + $0x138] sm:$0xff]  ;;  %v68_v36 = vld [vmem:[#allocation5 + $0xb0] sm:$0xff]  ;;  %v67_v40 = vld [vmem:[#allocation5 + $0xa8] sm:$0xff] }
  0x27   :  { %522 = vmatprep.subr.mxu1 %v104_v21  ;;  %488 = vmatpush3.msra.mxu0 %v56_v22  ;;  %v100_v37 = vld [vmem:[#allocation5 + $0x1b0] sm:$0xff]  ;;  %v99_v41 = vld [vmem:[#allocation5 + $0x1a8] sm:$0xff]  ;;  %v66_v44 = vld [vmem:[#allocation5 + $0xa0] sm:$0xff] }
  0x28   :  { %523 = vmatpush3.msra.mxu1 %v88_v23  ;;  %489 = vmatprep.subr.mxu0 %v71_v24  ;;  %v52_v38 = vld [vmem:[#allocation5 + $0x30] sm:$0xff]  ;;  %v51_v42 = vld [vmem:[#allocation5 + $0x28] sm:$0xff]  ;;  %v98_v45 = vld [vmem:[#allocation5 + $0x1a0] sm:$0xff] }
  0x29   :  { %524 = vmatprep.subr.mxu1 %v103_v25  ;;  %490 = vmatpush3.msra.mxu0 %v55_v26  ;;  %v84_v39 = vld [vmem:[#allocation5 + $0x130] sm:$0xff]  ;;  %v83_v43 = vld [vmem:[#allocation5 + $0x128] sm:$0xff]  ;;  %v50_v46 = vld [vmem:[#allocation5 + $0x20] sm:$0xff] }
  0x2a   :  { %525 = vmatpush3.msra.mxu1 %v87_v27  ;;  %491 = vmatprep.subr.mxu0 %v70_v28  ;;  %v82_v47 = vld [vmem:[#allocation5 + $0x120] sm:$0xff]  ;;  %v65_v48 = vld [vmem:[#allocation5 + $0x98] sm:$0xff]  ;;  %v64_v52 = vld [vmem:[#allocation5 + $0x90] sm:$0xff] }
  0x2b   :  { %526 = vmatprep.subr.mxu1 %v102_v29  ;;  %492 = vmatpush3.msra.mxu0 %v54_v30  ;;  %v97_v49 = vld [vmem:[#allocation5 + $0x198] sm:$0xff]  ;;  %v96_v53 = vld [vmem:[#allocation5 + $0x190] sm:$0xff]  ;;  %v63_v56 = vld [vmem:[#allocation5 + $0x88] sm:$0xff] }
  0x2c   :  { %527 = vmatpush3.msra.mxu1 %v86_v31  ;;  %493 = vmatprep.subr.mxu0 %v69_v32  ;;  %v49_v50 = vld [vmem:[#allocation5 + $0x18] sm:$0xff]  ;;  %v48_v54 = vld [vmem:[#allocation5 + $0x10] sm:$0xff]  ;;  %v95_v57 = vld [vmem:[#allocation5 + $0x188] sm:$0xff] }
  0x2d   :  { %528 = vmatprep.subr.mxu1 %v101_v33  ;;  %494 = vmatpush3.msra.mxu0 %v53_v34  ;;  %v81_v51 = vld [vmem:[#allocation5 + $0x118] sm:$0xff]  ;;  %v80_v55 = vld [vmem:[#allocation5 + $0x110] sm:$0xff]  ;;  %v47_v58 = vld [vmem:[#allocation5 + $0x8] sm:$0xff] }
  0x2e   :  { %529 = vmatpush3.msra.mxu1 %v85_v35  ;;  %495 = vmatprep.subr.mxu0 %v68_v36  ;;  %v79_v59 = vld [vmem:[#allocation5 + $0x108] sm:$0xff]  ;;  %v62_v60 = vld [vmem:[#allocation5 + $0x80] sm:$0xff]  ;;  %v41_v1 = vld [vmem:[#allocation2 + $0x18] sm:$0xff] }
  0x2f   :  { %530 = vmatprep.subr.mxu1 %v100_v37  ;;  %496 = vmatpush3.msra.mxu0 %v52_v38  ;;  %v94_v61 = vld [vmem:[#allocation5 + $0x180] sm:$0xff]  ;;  %v39_v63 = vld [vmem:[#allocation2 + $0x8] sm:$0xff]  ;;  %v40_v3 = vld [vmem:[#allocation2 + $0x10] sm:$0xff] }
  0x30   :  { %531 = vmatpush3.msra.mxu1 %v84_v39  ;;  %497 = vmatprep.subr.mxu0 %v67_v40  ;;  %v46_v62 = vld [vmem:[#allocation5] sm:$0xff]  ;;  %v141_v4 = vld [vmem:[#allocation5 + $0x2f8] sm:$0xff]  ;;  %v140_v8 = vld [vmem:[#allocation5 + $0x2f0] sm:$0xff] }
  0x31   :  { %532 = vmatprep.subr.mxu1 %v99_v41  ;;  %498 = vmatpush3.msra.mxu0 %v51_v42  ;;  %v78_v0 = vld [vmem:[#allocation5 + $0x100] sm:$0xff]  ;;  %v173_v5 = vld [vmem:[#allocation5 + $0x3f8] sm:$0xff]  ;;  %v172_v9 = vld [vmem:[#allocation5 + $0x3f0] sm:$0xff] }
  0x32   :  { %533 = vmatpush3.msra.mxu1 %v83_v43  ;;  %499 = vmatprep.subr.mxu0 %v66_v44  ;;  %v38_v2 = vld [vmem:[#allocation2] sm:$0xff]  ;;  %v125_v6 = vld [vmem:[#allocation5 + $0x278] sm:$0xff]  ;;  %v124_v10 = vld [vmem:[#allocation5 + $0x270] sm:$0xff] }
  0x33   :  { %534 = vmatprep.subr.mxu1 %v98_v45  ;;  %500 = vmatpush3.msra.mxu0 %v50_v46  ;;  %v157_v7 = vld [vmem:[#allocation5 + $0x378] sm:$0xff]  ;;  %v156_v11 = vld [vmem:[#allocation5 + $0x370] sm:$0xff]  ;;  %v139_v12 = vld [vmem:[#allocation5 + $0x2e8] sm:$0xff] }
  0x34   :  { %535 = vmatpush3.msra.mxu1 %v82_v47  ;;  %501 = vmatprep.subr.mxu0 %v65_v48  ;;  %v171_v13 = vld [vmem:[#allocation5 + $0x3e8] sm:$0xff]  ;;  %v138_v16 = vld [vmem:[#allocation5 + $0x2e0] sm:$0xff]  ;;  %v137_v20 = vld [vmem:[#allocation5 + $0x2d8] sm:$0xff] }
  0x35   :  { %536 = vmatprep.subr.mxu1 %v97_v49  ;;  %502 = vmatpush3.msra.mxu0 %v49_v50  ;;  %v123_v14 = vld [vmem:[#allocation5 + $0x268] sm:$0xff]  ;;  %v170_v17 = vld [vmem:[#allocation5 + $0x3e0] sm:$0xff]  ;;  %v169_v21 = vld [vmem:[#allocation5 + $0x3d8] sm:$0xff] }
  0x36   :  { %537 = vmatpush3.msra.mxu1 %v81_v51  ;;  %503 = vmatprep.subr.mxu0 %v64_v52  ;;  %v155_v15 = vld [vmem:[#allocation5 + $0x368] sm:$0xff]  ;;  %v122_v18 = vld [vmem:[#allocation5 + $0x260] sm:$0xff]  ;;  %v121_v22 = vld [vmem:[#allocation5 + $0x258] sm:$0xff] }
  0x37   :  { %538 = vmatprep.subr.mxu1 %v96_v53  ;;  %504 = vmatpush3.msra.mxu0 %v48_v54  ;;  %v154_v19 = vld [vmem:[#allocation5 + $0x360] sm:$0xff]  ;;  %v153_v23 = vld [vmem:[#allocation5 + $0x358] sm:$0xff]  ;;  %v136_v24 = vld [vmem:[#allocation5 + $0x2d0] sm:$0xff] }
  0x38   :  { %539 = vmatpush3.msra.mxu1 %v80_v55  ;;  %505 = vmatprep.subr.mxu0 %v63_v56  ;;  %v168_v25 = vld [vmem:[#allocation5 + $0x3d0] sm:$0xff]  ;;  %v135_v28 = vld [vmem:[#allocation5 + $0x2c8] sm:$0xff]  ;;  %v134_v32 = vld [vmem:[#allocation5 + $0x2c0] sm:$0xff] }
  0x39   :  { %540 = vmatprep.subr.mxu1 %v95_v57  ;;  %506 = vmatpush3.msra.mxu0 %v47_v58  ;;  %v120_v26 = vld [vmem:[#allocation5 + $0x250] sm:$0xff]  ;;  %v167_v29 = vld [vmem:[#allocation5 + $0x3c8] sm:$0xff]  ;;  %v166_v33 = vld [vmem:[#allocation5 + $0x3c0] sm:$0xff] }
  0x3a   :  { %541 = vmatpush3.msra.mxu1 %v79_v59  ;;  %507 = vmatprep.subr.mxu0 %v62_v60  ;;  %v152_v27 = vld [vmem:[#allocation5 + $0x350] sm:$0xff]  ;;  %v119_v30 = vld [vmem:[#allocation5 + $0x248] sm:$0xff]  ;;  %v118_v34 = vld [vmem:[#allocation5 + $0x240] sm:$0xff] }
  0x3b   :  { %542 = vmatprep.subr.mxu1 %v94_v61  ;;  %508 = vmatpush3.msra.mxu0 %v46_v62  ;;  %v151_v31 = vld [vmem:[#allocation5 + $0x348] sm:$0xff]  ;;  %v150_v35 = vld [vmem:[#allocation5 + $0x340] sm:$0xff]  ;;  %v133_v36 = vld [vmem:[#allocation5 + $0x2b8] sm:$0xff] }
  0x3c   :  { %238 = vmatprep.mubr.f32.mxu0 %v39_v63  ;;  %543 = vmatpush3.msra.mxu1 %v78_v0  ;;  %v165_v37 = vld [vmem:[#allocation5 + $0x3b8] sm:$0xff]  ;;  %v132_v40 = vld [vmem:[#allocation5 + $0x2b0] sm:$0xff]  ;;  %v131_v44 = vld [vmem:[#allocation5 + $0x2a8] sm:$0xff] }
  0x3d   :  { %308 = vmatprep.mubr.f32.mxu1 %v41_v1  ;;  %239 = vmatmul.mubr.f32.vlgmr.msra.gmra.mxu0 %v38_v2  ;;  %v117_v38 = vld [vmem:[#allocation5 + $0x238] sm:$0xff]  ;;  %v164_v41 = vld [vmem:[#allocation5 + $0x3b0] sm:$0xff]  ;;  %v163_v45 = vld [vmem:[#allocation5 + $0x3a8] sm:$0xff] }
  0x3e   :  { %309 = vmatmul.mubr.f32.vlgmr.msra.gmra.mxu1 %v40_v3  ;;  %547 = vmatprep.subr.mxu0 %v141_v4  ;;  %v149_v39 = vld [vmem:[#allocation5 + $0x338] sm:$0xff]  ;;  %v116_v42 = vld [vmem:[#allocation5 + $0x230] sm:$0xff]  ;;  %v115_v46 = vld [vmem:[#allocation5 + $0x228] sm:$0xff] }
  0x3f   :  { %582 = vmatprep.subr.mxu1 %v173_v5  ;;  %548 = vmatpush3.msra.mxu0 %v125_v6  ;;  %v148_v43 = vld [vmem:[#allocation5 + $0x330] sm:$0xff]  ;;  %v147_v47 = vld [vmem:[#allocation5 + $0x328] sm:$0xff]  ;;  %v130_v48 = vld [vmem:[#allocation5 + $0x2a0] sm:$0xff] }
  0x40   :  { %583 = vmatpush3.msra.mxu1 %v157_v7  ;;  %549 = vmatprep.subr.mxu0 %v140_v8  ;;  %v162_v49 = vld [vmem:[#allocation5 + $0x3a0] sm:$0xff]  ;;  %v129_v52 = vld [vmem:[#allocation5 + $0x298] sm:$0xff]  ;;  %v128_v56 = vld [vmem:[#allocation5 + $0x290] sm:$0xff] }
  0x41   :  { %584 = vmatprep.subr.mxu1 %v172_v9  ;;  %550 = vmatpush3.msra.mxu0 %v124_v10  ;;  %v114_v50 = vld [vmem:[#allocation5 + $0x220] sm:$0xff]  ;;  %v161_v53 = vld [vmem:[#allocation5 + $0x398] sm:$0xff]  ;;  %v160_v57 = vld [vmem:[#allocation5 + $0x390] sm:$0xff] }
  0x42   :  { %585 = vmatpush3.msra.mxu1 %v156_v11  ;;  %551 = vmatprep.subr.mxu0 %v139_v12  ;;  %v146_v51 = vld [vmem:[#allocation5 + $0x320] sm:$0xff]  ;;  %v113_v54 = vld [vmem:[#allocation5 + $0x218] sm:$0xff]  ;;  %v112_v58 = vld [vmem:[#allocation5 + $0x210] sm:$0xff] }
  0x43   :  { %586 = vmatprep.subr.mxu1 %v171_v13  ;;  %552 = vmatpush3.msra.mxu0 %v123_v14  ;;  %v145_v55 = vld [vmem:[#allocation5 + $0x318] sm:$0xff]  ;;  %v144_v59 = vld [vmem:[#allocation5 + $0x310] sm:$0xff]  ;;  %v127_v60 = vld [vmem:[#allocation5 + $0x288] sm:$0xff] }
  0x44   :  { %587 = vmatpush3.msra.mxu1 %v155_v15  ;;  %553 = vmatprep.subr.mxu0 %v138_v16  ;;  %v159_v61 = vld [vmem:[#allocation5 + $0x388] sm:$0xff]  ;;  %v126_v0 = vld [vmem:[#allocation5 + $0x280] sm:$0xff]  ;;  %v45_v5 = vld [vmem:[#allocation2 + $0x38] sm:$0xff] }
  0x45   :  { %588 = vmatprep.subr.mxu1 %v170_v17  ;;  %554 = vmatpush3.msra.mxu0 %v122_v18  ;;  %v111_v62 = vld [vmem:[#allocation5 + $0x208] sm:$0xff]  ;;  %v158_v1 = vld [vmem:[#allocation5 + $0x380] sm:$0xff]  ;;  %v44_v7 = vld [vmem:[#allocation2 + $0x30] sm:$0xff] }
  0x46   :  { %589 = vmatpush3.msra.mxu1 %v154_v19  ;;  %555 = vmatprep.subr.mxu0 %v137_v20  ;;  %v143_v63 = vld [vmem:[#allocation5 + $0x308] sm:$0xff]  ;;  %v110_v2 = vld [vmem:[#allocation5 + $0x200] sm:$0xff] }
  0x47   :  { %590 = vmatprep.subr.mxu1 %v169_v21  ;;  %556 = vmatpush3.msra.mxu0 %v121_v22  ;;  %v43_v3 = vld [vmem:[#allocation2 + $0x28] sm:$0xff]  ;;  %v142_v4 = vld [vmem:[#allocation5 + $0x300] sm:$0xff] }
  0x48   :  { %591 = vmatpush3.msra.mxu1 %v153_v23  ;;  %557 = vmatprep.subr.mxu0 %v136_v24  ;;  %v42_v6 = vld [vmem:[#allocation2 + $0x20] sm:$0xff] }
  0x49   :  { %592 = vmatprep.subr.mxu1 %v168_v25  ;;  %558 = vmatpush3.msra.mxu0 %v120_v26 }
  0x4a   :  { %593 = vmatpush3.msra.mxu1 %v152_v27  ;;  %559 = vmatprep.subr.mxu0 %v135_v28 }
  0x4b   :  { %594 = vmatprep.subr.mxu1 %v167_v29  ;;  %560 = vmatpush3.msra.mxu0 %v119_v30 }
  0x4c   :  { %595 = vmatpush3.msra.mxu1 %v151_v31  ;;  %561 = vmatprep.subr.mxu0 %v134_v32 }
  0x4d   :  { %596 = vmatprep.subr.mxu1 %v166_v33  ;;  %562 = vmatpush3.msra.mxu0 %v118_v34 }
  0x4e   :  { %597 = vmatpush3.msra.mxu1 %v150_v35  ;;  %563 = vmatprep.subr.mxu0 %v133_v36 }
  0x4f   :  { %598 = vmatprep.subr.mxu1 %v165_v37  ;;  %564 = vmatpush3.msra.mxu0 %v117_v38 }
  0x50   :  { %599 = vmatpush3.msra.mxu1 %v149_v39  ;;  %565 = vmatprep.subr.mxu0 %v132_v40 }
  0x51   :  { %600 = vmatprep.subr.mxu1 %v164_v41  ;;  %566 = vmatpush3.msra.mxu0 %v116_v42 }
  0x52   :  { %601 = vmatpush3.msra.mxu1 %v148_v43  ;;  %567 = vmatprep.subr.mxu0 %v131_v44 }
  0x53   :  { %602 = vmatprep.subr.mxu1 %v163_v45  ;;  %568 = vmatpush3.msra.mxu0 %v115_v46 }
  0x54   :  { %603 = vmatpush3.msra.mxu1 %v147_v47  ;;  %569 = vmatprep.subr.mxu0 %v130_v48 }
  0x55   :  { %604 = vmatprep.subr.mxu1 %v162_v49  ;;  %570 = vmatpush3.msra.mxu0 %v114_v50 }
  0x56   :  { %605 = vmatpush3.msra.mxu1 %v146_v51  ;;  %571 = vmatprep.subr.mxu0 %v129_v52 }
  0x57   :  { %606 = vmatprep.subr.mxu1 %v161_v53  ;;  %572 = vmatpush3.msra.mxu0 %v113_v54 }
  0x58   :  { %607 = vmatpush3.msra.mxu1 %v145_v55  ;;  %573 = vmatprep.subr.mxu0 %v128_v56 }
  0x59   :  { %608 = vmatprep.subr.mxu1 %v160_v57  ;;  %574 = vmatpush3.msra.mxu0 %v112_v58 }
  0x5a   :  { %609 = vmatpush3.msra.mxu1 %v144_v59  ;;  %575 = vmatprep.subr.mxu0 %v127_v60 }
  0x5b   :  { %610 = vmatprep.subr.mxu1 %v159_v61  ;;  %576 = vmatpush3.msra.mxu0 %v111_v62 }
  0x5c   :  { %611 = vmatpush3.msra.mxu1 %v143_v63  ;;  %577 = vmatprep.subr.mxu0 %v126_v0 }
  0x5d   :  { %612 = vmatprep.subr.mxu1 %v158_v1  ;;  %578 = vmatpush3.msra.mxu0 %v110_v2 }
  0x5e   :  { %378 = vmatprep.mubr.f32.mxu0 %v43_v3  ;;  %613 = vmatpush3.msra.mxu1 %v142_v4 }
  0x5f   :  { %448 = vmatprep.mubr.f32.mxu1 %v45_v5  ;;  %379 = vmatmul.mubr.f32.vlgmr.msra.gmra.mxu0 %v42_v6 }
  0x60   :  { %449 = vmatmul.mubr.f32.vlgmr.msra.gmra.mxu1 %v44_v7 }
  0xfd   :  { %v509_v8 = vpop.f32.mrf.mxu0 }
  0xfe   :  { %v544_v9 = vpop.f32.mrf.mxu1 }
  0xff   :  { %v510_v10 = vpop.f32.mrf.mxu0 }
 0x100   :  { %v545_v11 = vpop.f32.mrf.mxu1  ;;  %v511_v12 = vadd.f32 %v510_v10, %v509_v8 }
 0x101   :  { %v546_v13 = vadd.f32 %v545_v11, %v544_v9 }
 0x103   :  { %v311_v18 = vadd.f32 %v546_v13, %v511_v12 }
 0x11f   :  { %v579_v14 = vpop.f32.mrf.mxu0 }
 0x120   :  { %v614_v15 = vpop.f32.mrf.mxu1 }
 0x121   :  { %v580_v16 = vpop.f32.mrf.mxu0 }
 0x122   :  { %v615_v17 = vpop.f32.mrf.mxu1  ;;  %v581_v19 = vadd.f32 %v580_v16, %v579_v14 }
 0x123   :  { %v616_v21 = vadd.f32 %v615_v17, %v614_v15 }
 0x124   :  { %v381_v20 = vadd.f32 %v581_v19, %v311_v18 }
 0x126   :  { %v451_v22 = vadd.f32 %v616_v21, %v381_v20 }
 0x128   :  { %v454_v23 = vmul.f32 %v451_v22, %v451_v22 }
 0x12a   :  { %455 = vadd.xlane.f32.xlu0 %v454_v23 }
 0x1b3   :  { %v456_v24 = vpop.xlane.xlu0 %455 }
 0x1b4   :  { %v457_v25 = vmax.f32 %v456_v24, 1e-24 }
 0x1b6   :  { %622 = vrsqrt.f32 %v457_v25 }
 0x1c3   :  { %v623_v26 = vpop.eup %622 }
 0x1c4   :  { %v459_v27 = vmul.f32 %v623_v26, %v451_v22 }
 0x1c6   :  { %460 = vst [vmem:[#allocation7] sm:$0xff] %v459_v27 }
 0x1c7   :  { %675 = shalt.err (!%p672_p0)
}
 0x1c8   :  { %470 = dma.vmem_to_hbm [thread:$0]  %s468_s1, 128, %s721_s2, [#allocation4]  }
 0x1c9   :  { %688 = dma.done.wait [#allocation4], 128  }
 0x1ca   :  { %689 = vsyncadd [#allocation4], 4294967168 }
 0x1cb   :  { %474 = vsyncpa [#allocation3], 1 }
 0x1cc   :  { %475 = vsyncpa [#allocation6], 1 }
 0x1cd   :  { %476 = vsyncpa [#allocation4], 1 }

</bundles_post_ra>
